<compile_context>
chip_gen: v5e
topology: v5e:2x2
jax: 0.10.0
libtpu: 0.0.40
codegen_flags: <defaults>
</compile_context>

<pallas_src>
import functools

import jax
import jax.numpy as jnp
from jax.experimental import pallas as pl
from jax.experimental.pallas import tpu as pltpu


def cnn_block_kernel(x_ref, w_ref, bias_ref, o_ref, *, taps, cin):
    """One grid step = one (image, Cout-tile) pair.

    x_ref:    (1, S*S*Cin, L)  padded input; stride phases stacked on sublanes,
                               flattened coarse spatial (length L) on lanes.
    w_ref:    (T, Ct, Cin)     per-tap conv weights, BN scale pre-folded.
    bias_ref: (Ct, 1)          folded BN bias = beta - mean * scale (f32).
    o_ref:    (1, Ct, M)       output tile; M = Ho*Wc flattened spatial (lane-dense).
    taps:     static tuple of (sublane_row_start, lane_offset) per (kh, kw) tap.
    """
    m = o_ref.shape[2]

    # Per-tap shifted VMEM reads feeding MXU matmuls, f32 accumulation.
    rs0, off0 = taps[0]
    acc = jnp.dot(w_ref[0], x_ref[0, rs0:rs0 + cin, off0:off0 + m],
                  preferred_element_type=jnp.float32)
    for t in range(1, len(taps)):
        rs, off = taps[t]
        acc = acc + jnp.dot(w_ref[t], x_ref[0, rs:rs + cin, off:off + m],
                            preferred_element_type=jnp.float32)

    # Fused (folded, eval-mode) BatchNorm bias + SiLU, f32 on the VPU/EUP.
    y = acc + bias_ref[...]
    o_ref[0] = (y * jax.nn.sigmoid(y)).astype(o_ref.dtype)


def _pick_cout_tile(cout):
    """Largest MXU-friendly row tile dividing Cout, else the full extent."""
    for t in (512, 256, 128):
        if cout % t == 0:
            return t
    return cout


def cnn_block(x_nchw, w_oihw, gamma, beta, running_mean, running_var, *,
              stride=1, padding=1, groups=1, eps=1e-5,
              compute_dtype=jnp.bfloat16, out_dtype=None):
    """Pallas implementation of CNNBlock.forward (eval-mode BN), groups=1.

    x_nchw: (N, Cin, H, W); w_oihw: (Cout, Cin, KH, KW) (bias=False).
    Returns (N, Cout, Ho, Wo) in out_dtype (default: x's dtype).  Pass
    out_dtype=jnp.bfloat16 to halve output HBM traffic for bf16 consumers.
    """
    if groups != 1:
        raise NotImplementedError("cnn_block: only groups=1 is supported")
    if out_dtype is None:
        out_dtype = x_nchw.dtype

    N, Cin, H, W = x_nchw.shape
    Cout, _, KH, KW = w_oihw.shape
    s, p = stride, padding
    Ho = (H + 2 * p - KH) // s + 1
    Wo = (W + 2 * p - KW) // s + 1
    qh, qw = (KH - 1) // s, (KW - 1) // s        # coarse-grid halo per side
    Hc, Wc = Ho + qh, Wo + qw                    # coarse (phase-grid) extents
    Hc_alloc = Hc + (1 if qw > 0 else 0)         # guard row: tap slices overrun by <= qw lanes
    tgt_h, tgt_w = Hc_alloc * s, Wc * s

    # ---- zero-pad (conv padding + guard rows), then crop to the phase grid.
    pad_b = max(tgt_h - p - H, 0)
    pad_r = max(tgt_w - p - W, 0)
    xp = x_nchw
    if p or pad_b or pad_r:
        xp = jnp.pad(xp, ((0, 0), (0, 0), (p, pad_b), (p, pad_r)))
    xp = xp[:, :, :tgt_h, :tgt_w]

    # ---- space-to-phase: (N, Cin, Hc*s, Wc*s) -> (N, S*S*Cin, L).
    # For stride==1 the transpose/reshapes are metadata-only (no HBM pass).
    L = Hc_alloc * Wc
    phases = xp.reshape(N, Cin, Hc_alloc, s, Wc, s)
    phases = phases.transpose(0, 3, 5, 1, 2, 4).reshape(N, s * s * Cin, L)
    phases = phases.astype(compute_dtype)

    # ---- fold eval-mode BatchNorm: scale into the weights, bias stays separate.
    scale = (gamma / jnp.sqrt(running_var + eps)).astype(jnp.float32)
    bias = (beta.astype(jnp.float32) - running_mean.astype(jnp.float32) * scale)
    w_folded = w_oihw.astype(jnp.float32) * scale[:, None, None, None]
    # (KH*KW, Cout, Cin): one (Cout, Cin) matmul operand per tap.
    w_taps = w_folded.transpose(2, 3, 0, 1).reshape(KH * KW, Cout, Cin)
    w_taps = w_taps.astype(compute_dtype)        # cast the product, not the operands
    bias = bias.reshape(Cout, 1)

    # ---- static tap table: (sublane row start, lane offset) per (kh, kw).
    taps = tuple(((((kh % s) * s + (kw % s)) * Cin), (kh // s) * Wc + (kw // s))
                 for kh in range(KH) for kw in range(KW))

    M = Ho * Wc                                  # lane-dense flattened output extent
    T = KH * KW
    tile_cout = _pick_cout_tile(Cout)
    grid = (N, Cout // tile_cout)

    # ---- VMEM budget: double-buffered blocks, f32 accumulator; cap at 48 MiB
    # (safe on v7x's 64 MiB/TC; v5e/v6e have 128 MiB so this is never binding).
    in_size = jnp.dtype(compute_dtype).itemsize
    out_size = jnp.dtype(out_dtype).itemsize
    x_block = s * s * Cin * L * in_size
    w_block = T * tile_cout * Cin * in_size
    o_block = tile_cout * M * out_size
    need = (2 * x_block + 2 * w_block + 2 * o_block
            + tile_cout * M * 4 + 2 * tile_cout * 4)
    vmem_limit = int(min(max(2 * need, 32 * 2 ** 20), 48 * 2 ** 20))

    cost = pl.CostEstimate(
        flops=2 * N * Cout * Cin * KH * KW * Ho * Wo,
        transcendentals=N * Cout * M,                       # sigmoid
        bytes_accessed=(phases.size * in_size               # padded input
                        + w_taps.size * in_size             # folded weights
                        + Cout * 4                          # bias
                        + N * Cout * M * out_size),         # output
    )

    out = pl.pallas_call(
        functools.partial(cnn_block_kernel, taps=taps, cin=Cin),
        out_shape=jax.ShapeDtypeStruct((N, Cout, M), out_dtype),
        grid=grid,
        in_specs=[
            # Whole padded image: constant index along the Cout axis -> one DMA per image.
            pl.BlockSpec((1, s * s * Cin, L), lambda n, c: (n, 0, 0)),
            pl.BlockSpec((T, tile_cout, Cin), lambda n, c: (0, c, 0)),
            pl.BlockSpec((tile_cout, 1), lambda n, c: (c, 0)),
        ],
        out_specs=pl.BlockSpec((1, tile_cout, M), lambda n, c: (n, c, 0)),
        compiler_params=pltpu.CompilerParams(
            dimension_semantics=("parallel", "parallel"),
            vmem_limit_bytes=vmem_limit),
        cost_estimate=cost,
    )(phases, w_taps, bias)

    # (N, Cout, Ho*Wc) is NCHW with (virtual-width) flattened spatial dims:
    # reshape is metadata-only; drop the Wc-Wo virtual columns only if KW > stride.
    out = out.reshape(N, Cout, Ho, Wc)
    if Wc != Wo:
        out = out[:, :, :, :Wo]
    return out


def _reference(x_nchw, w_oihw, gamma, beta, mean, var, *, stride, padding,
               eps=1e-5):
    """Pure-JAX reference matching PyTorch eval-mode semantics (f32)."""
    conv = jax.lax.conv_general_dilated(
        x_nchw, w_oihw, window_strides=(stride, stride),
        padding=[(padding, padding), (padding, padding)],
        dimension_numbers=("NCHW", "OIHW", "NCHW"))
    scale = gamma / jnp.sqrt(var + eps)
    bias = beta - mean * scale
    y = conv * scale[None, :, None, None] + bias[None, :, None, None]
    return y * jax.nn.sigmoid(y)


def _run_case(name, key, N, Cin, H, W, Cout, KH, KW, stride, padding,
              compute_dtype, atol, rtol, random_bn=False):
    kx, kw, kb = jax.random.split(key, 3)
    x = jax.random.normal(kx, (N, Cin, H, W), dtype=jnp.float32)
    # kaiming_normal_(mode='fan_out', nonlinearity='relu'): std = sqrt(2/fan_out)
    fan_out = Cout * KH * KW
    w = jax.random.normal(kw, (Cout, Cin, KH, KW), jnp.float32) * jnp.sqrt(2.0 / fan_out)
    if random_bn:
        kg, kbt, km, kv = jax.random.split(kb, 4)
        gamma = 1.0 + 0.1 * jax.random.normal(kg, (Cout,), jnp.float32)
        beta = 0.1 * jax.random.normal(kbt, (Cout,), jnp.float32)
        mean = 0.1 * jax.random.normal(km, (Cout,), jnp.float32)
        var = jax.random.uniform(kv, (Cout,), jnp.float32, 0.5, 1.5)
    else:
        # BatchNorm2d parameters as initialized by the module.
        gamma = jnp.ones((Cout,), jnp.float32)
        beta = jnp.zeros((Cout,), jnp.float32)
        mean = jnp.zeros((Cout,), jnp.float32)
        var = jnp.ones((Cout,), jnp.float32)

    ref = _reference(x, w, gamma, beta, mean, var, stride=stride, padding=padding)
    out = jax.block_until_ready(
        cnn_block(x, w, gamma, beta, mean, var, stride=stride, padding=padding,
                  compute_dtype=compute_dtype))
    assert out.shape == ref.shape, (name, out.shape, ref.shape)
    err = float(jnp.max(jnp.abs(out.astype(jnp.float32) - ref)))
    assert jnp.allclose(out, ref, atol=atol, rtol=rtol), (name, err)
    return err


if __name__ == "__main__":
    key = jax.random.PRNGKey(0)
    k1, k2, k3 = jax.random.split(key, 3)

    # Primary config: CNNBlock(4, 8, kernel_size=3, stride=1, padding=1).
    # bf16 fast path (loose tolerance) + f32 strict path (validates tap/phase
    # layout and BN folding).
    _run_case("3x3_s1_bf16", k1, 2, 4, 16, 16, 8, 3, 3, 1, 1, jnp.bfloat16, 5e-2, 5e-2)
    _run_case("3x3_s1_f32",  k1, 2, 4, 16, 16, 8, 3, 3, 1, 1, jnp.float32, 1e-4, 1e-4)
    # Stride-2 (stem-style) block: exercises the stride-phase path.
    _run_case("3x3_s2_f32",  k2, 2, 4, 16, 16, 8, 3, 3, 2, 1, jnp.float32, 1e-4, 1e-4)
    # 1x1 expand-style block with non-trivial BN stats: exercises the
    # no-padding / no-virtual-column path and the scale-into-weights folding.
    _run_case("1x1_s1_f32",  k3, 2, 16, 8, 8, 32, 1, 1, 1, 0, jnp.float32, 1e-4, 1e-4,
              random_bn=True)

    print("KERNEL_OK")
</pallas_src>

<mosaic_0001>
module attributes {stable_mosaic.version = 11 : i64} {
  func.func @cnn_block_kernel(%arg0: i32, %arg1: i32, %arg2: memref<1x4x342xbf16, #tpu.memory_space<vmem>>, %arg3: memref<9x8x4xbf16, #tpu.memory_space<vmem>>, %arg4: memref<8x1xf32, #tpu.memory_space<vmem>>, %arg5: memref<1x8x288xf32, #tpu.memory_space<vmem>>) attributes {dimension_semantics = [#tpu.dimension_semantics<parallel>, #tpu.dimension_semantics<parallel>], iteration_bounds = array<i64: 2, 1>, scalar_prefetch = 0 : i64, scratch_operands = 0 : i64, tpu.core_type = #tpu.core_type<tc>, window_params = [{transform_indices = @transform_0, window_bounds = array<i64: 1, 4, 342>}, {transform_indices = @transform_1, window_bounds = array<i64: 9, 8, 4>}, {transform_indices = @transform_2, window_bounds = array<i64: 8, 1>}, {transform_indices = @transform_3, window_bounds = array<i64: 1, 8, 288>}]} {
    %c0 = arith.constant 0 : index
    %c0_0 = arith.constant 0 : index
    %c0_1 = arith.constant 0 : index
    %0 = vector.load %arg3[%c0, %c0_0, %c0_1] : memref<9x8x4xbf16, #tpu.memory_space<vmem>>, vector<1x8x4xbf16>
    %1 = vector.shape_cast %0 : vector<1x8x4xbf16> to vector<8x4xbf16>
    %c0_2 = arith.constant 0 : index
    %c0_3 = arith.constant 0 : index
    %c0_4 = arith.constant 0 : index
    %2 = vector.load %arg2[%c0_2, %c0_3, %c0_4] : memref<1x4x342xbf16, #tpu.memory_space<vmem>>, vector<1x4x288xbf16>
    %3 = vector.shape_cast %2 : vector<1x4x288xbf16> to vector<4x288xbf16>
    %cst = arith.constant dense<0.000000e+00> : vector<8x288xf32>
    %4 = tpu.matmul %1, %3, %cst {dimension_numbers = #tpu.dot_dimension_numbers<[1], [0], [0], [1], [0, 0, 1, 1], [], []>} : vector<8x4xbf16>, vector<4x288xbf16>, vector<8x288xf32> -> vector<8x288xf32>
    %c1 = arith.constant 1 : index
    %c0_5 = arith.constant 0 : index
    %c0_6 = arith.constant 0 : index
    %5 = vector.load %arg3[%c1, %c0_5, %c0_6] : memref<9x8x4xbf16, #tpu.memory_space<vmem>>, vector<1x8x4xbf16>
    %6 = vector.shape_cast %5 : vector<1x8x4xbf16> to vector<8x4xbf16>
    %c0_7 = arith.constant 0 : index
    %c0_8 = arith.constant 0 : index
    %c1_9 = arith.constant 1 : index
    %7 = vector.load %arg2[%c0_7, %c0_8, %c1_9] : memref<1x4x342xbf16, #tpu.memory_space<vmem>>, vector<1x4x288xbf16>
    %8 = vector.shape_cast %7 : vector<1x4x288xbf16> to vector<4x288xbf16>
    %cst_10 = arith.constant dense<0.000000e+00> : vector<8x288xf32>
    %9 = tpu.matmul %6, %8, %cst_10 {dimension_numbers = #tpu.dot_dimension_numbers<[1], [0], [0], [1], [0, 0, 1, 1], [], []>} : vector<8x4xbf16>, vector<4x288xbf16>, vector<8x288xf32> -> vector<8x288xf32>
    %10 = arith.addf %4, %9 : vector<8x288xf32>
    %c2 = arith.constant 2 : index
    %c0_11 = arith.constant 0 : index
    %c0_12 = arith.constant 0 : index
    %11 = vector.load %arg3[%c2, %c0_11, %c0_12] : memref<9x8x4xbf16, #tpu.memory_space<vmem>>, vector<1x8x4xbf16>
    %12 = vector.shape_cast %11 : vector<1x8x4xbf16> to vector<8x4xbf16>
    %c0_13 = arith.constant 0 : index
    %c0_14 = arith.constant 0 : index
    %c2_15 = arith.constant 2 : index
    %13 = vector.load %arg2[%c0_13, %c0_14, %c2_15] : memref<1x4x342xbf16, #tpu.memory_space<vmem>>, vector<1x4x288xbf16>
    %14 = vector.shape_cast %13 : vector<1x4x288xbf16> to vector<4x288xbf16>
    %cst_16 = arith.constant dense<0.000000e+00> : vector<8x288xf32>
    %15 = tpu.matmul %12, %14, %cst_16 {dimension_numbers = #tpu.dot_dimension_numbers<[1], [0], [0], [1], [0, 0, 1, 1], [], []>} : vector<8x4xbf16>, vector<4x288xbf16>, vector<8x288xf32> -> vector<8x288xf32>
    %16 = arith.addf %10, %15 : vector<8x288xf32>
    %c3 = arith.constant 3 : index
    %c0_17 = arith.constant 0 : index
    %c0_18 = arith.constant 0 : index
    %17 = vector.load %arg3[%c3, %c0_17, %c0_18] : memref<9x8x4xbf16, #tpu.memory_space<vmem>>, vector<1x8x4xbf16>
    %18 = vector.shape_cast %17 : vector<1x8x4xbf16> to vector<8x4xbf16>
    %c0_19 = arith.constant 0 : index
    %c0_20 = arith.constant 0 : index
    %c18 = arith.constant 18 : index
    %19 = vector.load %arg2[%c0_19, %c0_20, %c18] : memref<1x4x342xbf16, #tpu.memory_space<vmem>>, vector<1x4x288xbf16>
    %20 = vector.shape_cast %19 : vector<1x4x288xbf16> to vector<4x288xbf16>
    %cst_21 = arith.constant dense<0.000000e+00> : vector<8x288xf32>
    %21 = tpu.matmul %18, %20, %cst_21 {dimension_numbers = #tpu.dot_dimension_numbers<[1], [0], [0], [1], [0, 0, 1, 1], [], []>} : vector<8x4xbf16>, vector<4x288xbf16>, vector<8x288xf32> -> vector<8x288xf32>
    %22 = arith.addf %16, %21 : vector<8x288xf32>
    %c4 = arith.constant 4 : index
    %c0_22 = arith.constant 0 : index
    %c0_23 = arith.constant 0 : index
    %23 = vector.load %arg3[%c4, %c0_22, %c0_23] : memref<9x8x4xbf16, #tpu.memory_space<vmem>>, vector<1x8x4xbf16>
    %24 = vector.shape_cast %23 : vector<1x8x4xbf16> to vector<8x4xbf16>
    %c0_24 = arith.constant 0 : index
    %c0_25 = arith.constant 0 : index
    %c19 = arith.constant 19 : index
    %25 = vector.load %arg2[%c0_24, %c0_25, %c19] : memref<1x4x342xbf16, #tpu.memory_space<vmem>>, vector<1x4x288xbf16>
    %26 = vector.shape_cast %25 : vector<1x4x288xbf16> to vector<4x288xbf16>
    %cst_26 = arith.constant dense<0.000000e+00> : vector<8x288xf32>
    %27 = tpu.matmul %24, %26, %cst_26 {dimension_numbers = #tpu.dot_dimension_numbers<[1], [0], [0], [1], [0, 0, 1, 1], [], []>} : vector<8x4xbf16>, vector<4x288xbf16>, vector<8x288xf32> -> vector<8x288xf32>
    %28 = arith.addf %22, %27 : vector<8x288xf32>
    %c5 = arith.constant 5 : index
    %c0_27 = arith.constant 0 : index
    %c0_28 = arith.constant 0 : index
    %29 = vector.load %arg3[%c5, %c0_27, %c0_28] : memref<9x8x4xbf16, #tpu.memory_space<vmem>>, vector<1x8x4xbf16>
    %30 = vector.shape_cast %29 : vector<1x8x4xbf16> to vector<8x4xbf16>
    %c0_29 = arith.constant 0 : index
    %c0_30 = arith.constant 0 : index
    %c20 = arith.constant 20 : index
    %31 = vector.load %arg2[%c0_29, %c0_30, %c20] : memref<1x4x342xbf16, #tpu.memory_space<vmem>>, vector<1x4x288xbf16>
    %32 = vector.shape_cast %31 : vector<1x4x288xbf16> to vector<4x288xbf16>
    %cst_31 = arith.constant dense<0.000000e+00> : vector<8x288xf32>
    %33 = tpu.matmul %30, %32, %cst_31 {dimension_numbers = #tpu.dot_dimension_numbers<[1], [0], [0], [1], [0, 0, 1, 1], [], []>} : vector<8x4xbf16>, vector<4x288xbf16>, vector<8x288xf32> -> vector<8x288xf32>
    %34 = arith.addf %28, %33 : vector<8x288xf32>
    %c6 = arith.constant 6 : index
    %c0_32 = arith.constant 0 : index
    %c0_33 = arith.constant 0 : index
    %35 = vector.load %arg3[%c6, %c0_32, %c0_33] : memref<9x8x4xbf16, #tpu.memory_space<vmem>>, vector<1x8x4xbf16>
    %36 = vector.shape_cast %35 : vector<1x8x4xbf16> to vector<8x4xbf16>
    %c0_34 = arith.constant 0 : index
    %c0_35 = arith.constant 0 : index
    %c36 = arith.constant 36 : index
    %37 = vector.load %arg2[%c0_34, %c0_35, %c36] : memref<1x4x342xbf16, #tpu.memory_space<vmem>>, vector<1x4x288xbf16>
    %38 = vector.shape_cast %37 : vector<1x4x288xbf16> to vector<4x288xbf16>
    %cst_36 = arith.constant dense<0.000000e+00> : vector<8x288xf32>
    %39 = tpu.matmul %36, %38, %cst_36 {dimension_numbers = #tpu.dot_dimension_numbers<[1], [0], [0], [1], [0, 0, 1, 1], [], []>} : vector<8x4xbf16>, vector<4x288xbf16>, vector<8x288xf32> -> vector<8x288xf32>
    %40 = arith.addf %34, %39 : vector<8x288xf32>
    %c7 = arith.constant 7 : index
    %c0_37 = arith.constant 0 : index
    %c0_38 = arith.constant 0 : index
    %41 = vector.load %arg3[%c7, %c0_37, %c0_38] : memref<9x8x4xbf16, #tpu.memory_space<vmem>>, vector<1x8x4xbf16>
    %42 = vector.shape_cast %41 : vector<1x8x4xbf16> to vector<8x4xbf16>
    %c0_39 = arith.constant 0 : index
    %c0_40 = arith.constant 0 : index
    %c37 = arith.constant 37 : index
    %43 = vector.load %arg2[%c0_39, %c0_40, %c37] : memref<1x4x342xbf16, #tpu.memory_space<vmem>>, vector<1x4x288xbf16>
    %44 = vector.shape_cast %43 : vector<1x4x288xbf16> to vector<4x288xbf16>
    %cst_41 = arith.constant dense<0.000000e+00> : vector<8x288xf32>
    %45 = tpu.matmul %42, %44, %cst_41 {dimension_numbers = #tpu.dot_dimension_numbers<[1], [0], [0], [1], [0, 0, 1, 1], [], []>} : vector<8x4xbf16>, vector<4x288xbf16>, vector<8x288xf32> -> vector<8x288xf32>
    %46 = arith.addf %40, %45 : vector<8x288xf32>
    %c8 = arith.constant 8 : index
    %c0_42 = arith.constant 0 : index
    %c0_43 = arith.constant 0 : index
    %47 = vector.load %arg3[%c8, %c0_42, %c0_43] : memref<9x8x4xbf16, #tpu.memory_space<vmem>>, vector<1x8x4xbf16>
    %48 = vector.shape_cast %47 : vector<1x8x4xbf16> to vector<8x4xbf16>
    %c0_44 = arith.constant 0 : index
    %c0_45 = arith.constant 0 : index
    %c38 = arith.constant 38 : index
    %49 = vector.load %arg2[%c0_44, %c0_45, %c38] : memref<1x4x342xbf16, #tpu.memory_space<vmem>>, vector<1x4x288xbf16>
    %50 = vector.shape_cast %49 : vector<1x4x288xbf16> to vector<4x288xbf16>
    %cst_46 = arith.constant dense<0.000000e+00> : vector<8x288xf32>
    %51 = tpu.matmul %48, %50, %cst_46 {dimension_numbers = #tpu.dot_dimension_numbers<[1], [0], [0], [1], [0, 0, 1, 1], [], []>} : vector<8x4xbf16>, vector<4x288xbf16>, vector<8x288xf32> -> vector<8x288xf32>
    %52 = arith.addf %46, %51 : vector<8x288xf32>
    %c0_47 = arith.constant 0 : index
    %c0_48 = arith.constant 0 : index
    %53 = vector.load %arg4[%c0_47, %c0_48] : memref<8x1xf32, #tpu.memory_space<vmem>>, vector<8x1xf32>
    %54 = vector.broadcast %53 : vector<8x1xf32> to vector<8x288xf32>
    %55 = arith.addf %52, %54 : vector<8x288xf32>
    %56 = arith.negf %55 : vector<8x288xf32>
    %57 = math.exp %56 : vector<8x288xf32>
    %cst_49 = arith.constant 1.000000e+00 : f32
    %58 = vector.broadcast %cst_49 : f32 to vector<8x288xf32>
    %59 = arith.addf %58, %57 : vector<8x288xf32>
    %60 = arith.divf %58, %59 : vector<8x288xf32>
    %61 = arith.mulf %55, %60 : vector<8x288xf32>
    %c0_50 = arith.constant 0 : index
    %c0_51 = arith.constant 0 : index
    %c0_52 = arith.constant 0 : index
    %62 = vector.load %arg5[%c0_50, %c0_51, %c0_52] : memref<1x8x288xf32, #tpu.memory_space<vmem>>, vector<1x8x288xf32>
    %63 = vector.shape_cast %62 : vector<1x8x288xf32> to vector<8x288xf32>
    %64 = vector.shape_cast %61 : vector<8x288xf32> to vector<1x8x288xf32>
    tpu.vector_store %arg5[%c0_50, %c0_51, %c0_52], %64 {strides = array<i32>} : memref<1x8x288xf32, #tpu.memory_space<vmem>>, vector<1x8x288xf32>,
    return
  }
  func.func @transform_0(%arg0: i32, %arg1: i32) -> (i32, i32, i32) {
    %c0_i32 = arith.constant 0 : i32
    %c0_i32_0 = arith.constant 0 : i32
    %c0_i32_1 = arith.constant 0 : i32
    return %arg0, %c0_i32, %c0_i32_0 : i32, i32, i32
  }
  func.func @transform_1(%arg0: i32, %arg1: i32) -> (i32, i32, i32) {
    %c0_i32 = arith.constant 0 : i32
    %c0_i32_0 = arith.constant 0 : i32
    %c0_i32_1 = arith.constant 0 : i32
    return %c0_i32, %arg1, %c0_i32_0 : i32, i32, i32
  }
  func.func @transform_2(%arg0: i32, %arg1: i32) -> (i32, i32) {
    %c0_i32 = arith.constant 0 : i32
    %c0_i32_0 = arith.constant 0 : i32
    return %arg1, %c0_i32 : i32, i32
  }
  func.func @transform_3(%arg0: i32, %arg1: i32) -> (i32, i32, i32) {
    %c0_i32 = arith.constant 0 : i32
    %c0_i32_0 = arith.constant 0 : i32
    return %arg0, %arg1, %c0_i32 : i32, i32, i32
  }
}

</mosaic_0001>

<bundles_post_ra>
// kernel: tpu_custom_call.1
= control target key start
LH: loop header
LB: loop body
LE: loop exit
PB: predicated region body
PF: predicated region fallthrough
CT: control target
= control target key end

     0   :  { %8 = vsyncpa [#allocation3], 0  ;;  %s1508_s0 = inlined_call_operand.vmem [shape: bf16[2,4,342], index: 0, kind: input, shape index: {}]   ;;  %s1509_s1 = inlined_call_operand.vmem [shape: bf16[9,8,4], index: 1, kind: input, shape index: {}]   ;;  %s1510_s2 = inlined_call_operand.vmem [shape: f32[8,1], index: 2, kind: input, shape index: {}]   ;;  %s1511_s3 = inlined_call_operand.hbm [shape: f32[2,8,288], index: 3, kind: output, shape index: {}]  }
   0x1   :  { %10 = vsyncpa [#allocation3 + $0x1], 0  ;;  %s1292_s12 = smov 0   ;;  %s1294_s13 = smov 0  }
   0x2   :  { %s1296_s14 = smov 0   ;;  %s1298_s15 = smov 0  }
   0x3   :  { %s1300_s16 = smov 0   ;;  %s1302_s17 = smov 0  }
   0x4 LB: > { %s1054_s18 = sadd.s32 4294967295, %s1261_s17   ;;  %s1055_s19 = sadd.s32 4294967294, %s1261_s17   ;;  %s1261_s17 = sphi %s1302_s17, %s16_s17   ;;  %s1257_s16 = sphi %s1300_s16, %s1518_s16   ;;  %s1253_s15 = sphi %s1298_s15, %s1517_s15   ;;  %s1249_s14 = sphi %s1296_s14, %s1516_s14   ;;  %s1245_s13 = sphi %s1294_s13, %s1515_s13   ;;  %s1241_s12 = sphi %s1292_s12, %s1514_s12  }
   0x5   : > { %s28_s20 = sadd.s32 1, %s1257_s16  ;;  %s115_s21 = sadd.s32 1, %s1249_s14 }
   0x6   : > { %p30_p0 = scmp.ge.s32.totalorder %s28_s20, 2  ;;  %p125_p1 = scmp.ne.s32.totalorder %s1249_s14, %s1245_s13 }
   0x7   : > { %p126_p2 = scmp.eq.s32.totalorder %s1054_s18, 1  ;;  %p131_p3 = scmp.ne.s32.totalorder %s1245_s13, %s1241_s12 }
   0x8   : > { %s1520_s20 = smov (%p30_p0, %s28_s20), 0  ;;  %p132_p5 = scmp.eq.s32.totalorder %s1055_s19, 1 }
   0x9   : > { %p1332_p4 = por %p126_p2, %p125_p1  ;;  %s110_s23 = ssub.s32 %s1257_s16, %s1520_s20 }
   0xa   : > { %p1060_p6 = scmp.ge.s32.totalorder %s1261_s17, 1  ;;  %p113_p7 = scmp.eq.s32.totalorder %s110_s23, 0 }
   0xb   : > { %p1339_p8 = por %p132_p5, %p131_p3  ;;  %p172_p9 = scmp.lt.s32.totalorder %s1261_s17, 3 }
   0xc   : > { %s1345_s25 = scalar_select %p113_p7, %s1249_s14, %s115_s21  }
   0xd   : > { %p173_p10 = pnand %p1060_p6, %p172_p9 }
   0xe   : > { %p204_p11 = scmp.lt.s32.totalorder (!%p173_p10), %s1253_s15, 1  ;;  %s1263_s4 = smov (!%p173_p10), 127  }
   0xf   : > { %176 = sbr.rel (%p173_p10) target bundleno = 422 (0x1a6), region = 32  ;;  %s1264_s5 = smov (!%p173_p10), 126  }
  0x10   : > { %s1265_s6 = smov (!%p173_p10), 110   ;;  %s1266_s7 = smov (!%p173_p10), 109  }
  0x11   : > { %s1267_s8 = smov (!%p173_p10), 108   ;;  %s1268_s9 = smov (!%p173_p10), 92  }
  0x12   : > { %s1269_s10 = smov (!%p173_p10), 91   ;;  %s1270_s11 = smov (!%p173_p10), 90  }
  0x13   : > { %s201_s23 = sand.u32 (!%p173_p10), 1, %s1245_s13  }
  0x14   : > { %s205_s26 = scalar_select %p204_p11, %s1253_s15, 1  ;;  %vm243_vm0 = vcmask 1041408   ;;  %v218_v36 = vld [vmem:[%s1509_s1] sm:$0xf]  ;;  %vm239_vm1 = vcmask 31744   ;;  %vm236_vm2 = vcmask 1039360  }
  0x15   : > { %v1062_v44 = vld [vmem:[%s1509_s1 + $0x4] sm:$0xf]  ;;  %vm361_vm3 = vcmask 1031168   ;;  %v1069_v48 = vld [vmem:[%s1509_s1 + $0x8] sm:$0xf]  ;;  %vm435_vm4 = vcmask 900096  }
  0x16   : > { %s1104_s27 = smul.u32 6, %s205_s26  ;;  %vm509_vm5 = vcmask 891904   ;;  %vm583_vm6 = vcmask 883712   ;;  %vm657_vm7 = vcmask 752640   ;;  %vm731_vm8 = vcmask 744448  }
  0x17   : > { %vm805_vm9 = vcmask 736256   ;;  %s1103_s26 = smul.u32 24, %s201_s23 }
  0x18   : > { %s1352_s30 = scalar_lea.vmem %s1508_s0, %s1104_s27  ;;  %s1105_s27 = smul.u32 24, %s1253_s15 }
  0x19   : > { %v219_v0 = vld [vmem:[%s1352_s30] sm:$0x3f]  ;;  %s203_s28 = scalar_lea.vmem [#allocation2], %s1103_s26 }
  0x1a   : > { %223 = vst [vmem:[#allocation1] ss:$4 sm:$0xff] %v219_v0  ;;  %v346_v4 = vld [vmem:[%s1352_s30] sm:$0x3f]  ;;  %s951_s15 = sshll.u32 %s203_s28, 4  ;;  %s952_s15 = int_to_ptr.vmem [resolvable:$true] %s951_s15 }
  0x1b   : > { %v420_v8 = vld [vmem:[%s1352_s30] sm:$0x3f] }
  0x1c   : > { %v494_v12 = vld [vmem:[%s1352_s30] sm:$0x3f] }
  0x1d   : > { %v568_v16 = vld [vmem:[%s1352_s30] sm:$0x3f] }
  0x1e   : > { %v642_v20 = vld [vmem:[%s1352_s30] sm:$0x3f] }
  0x1f   : > { %v716_v24 = vld [vmem:[%s1352_s30] sm:$0x3f] }
  0x20   : > { %v790_v28 = vld [vmem:[%s1352_s30] sm:$0x3f] }
  0x21   : > { %v228_v1 = vld.sshfl [vmem:[#allocation1 + $0x10] sm:$0xff pattern:$0x73625140]  ;;  %v226_v2 = vld.sshfl [vmem:[#allocation1 + $0x8] sm:$0xff pattern:$0x73625140] }
  0x22   : > { %234 = vrot.lane.b32.xlu0 %v228_v1, %s1263_s4  ;;  %232 = vrot.lane.b32.xlu1 %v226_v2, %s1263_s4  ;;  %v224_v3 = vld.sshfl [vmem:[#allocation1] sm:$0xff pattern:$0x73625140]  ;;  %v1073_v1 = vld [vmem:[%s1509_s1 + $0xc] sm:$0xf] }
  0x23   : > { %292 = vst [vmem:[#allocation1] ss:$4 sm:$0xff] %v219_v0 }
  0x2a   : > { %230 = vrot.lane.b32.xlu0 %v224_v3, %s1263_s4  ;;  %v1356_v5 = vld.sshfl [vmem:[#allocation1] sm:$0xff pattern:$0x73625140]  ;;  %v1358_v6 = vld.sshfl [vmem:[#allocation1 + $0x8] sm:$0xff pattern:$0x73625140]  ;;  %s949_s4 = scalar_lea.hbm %s1511_s3, %s1105_s27 }
  0x2b   : > { %v1360_v7 = vld.sshfl [vmem:[#allocation1 + $0x10] sm:$0xff pattern:$0x73625140]  ;;  %v299_v35 = vsel %vm243_vm0, %v1356_v5, 0  ;;  %v301_v51 = vsel %vm243_vm0, %v1358_v6, 0 }
  0x2c   : > { %348 = vst [vmem:[#allocation1] ss:$4 sm:$0xff] %v346_v4  ;;  %312 = vmatpush.bf16.msra.mxu3 %v299_v35  ;;  %v303_v42 = vsel %vm243_vm0, %v1360_v7, 0 }
  0x2f   : > { %1066 = vmatmul.msk.bf16.vlgmr.msra.gmra.mxu3 %vm239_vm1, %v218_v36 }
  0x33   : > { %v349_v9 = vld.sshfl [vmem:[#allocation1] sm:$0xff pattern:$0x73625140]  ;;  %v351_v10 = vld.sshfl [vmem:[#allocation1 + $0x8] sm:$0xff pattern:$0x73625140] }
  0x34   : > { %355 = vrot.lane.b32.xlu1 %v349_v9, %s1264_s5  ;;  %357 = vrot.lane.b32.xlu2 %v351_v10, %s1264_s5  ;;  %v353_v11 = vld.sshfl [vmem:[#allocation1 + $0x10] sm:$0xff pattern:$0x73625140] }
  0x35   : > { %422 = vst [vmem:[#allocation1] ss:$4 sm:$0xff] %v420_v8 }
  0x3c   : > { %v427_v13 = vld.sshfl [vmem:[#allocation1 + $0x10] sm:$0xff pattern:$0x73625140]  ;;  %v423_v14 = vld.sshfl [vmem:[#allocation1] sm:$0xff pattern:$0x73625140]  ;;  %359 = vrot.lane.b32.xlu2 %v353_v11, %s1264_s5 }
  0x3d   : > { %433 = vrot.lane.b32.xlu1 %v427_v13, %s1265_s6  ;;  %v425_v15 = vld.sshfl [vmem:[#allocation1 + $0x8] sm:$0xff pattern:$0x73625140]  ;;  %s953_s5 = sshll.u32 %s949_s4, 4  ;;  %s954_s5 = int_to_ptr.hbm [resolvable:$true] %s953_s5 }
  0x3e   : > { %431 = vrot.lane.b32.xlu0 %v425_v15, %s1265_s6  ;;  %496 = vst [vmem:[#allocation1] ss:$4 sm:$0xff] %v494_v12  ;;  %v1081_v15 = vld [vmem:[%s1509_s1 + $0x14] sm:$0xf] }
  0x44   : > { %429 = vrot.lane.b32.xlu2 %v423_v14, %s1265_s6  ;;  %s936_s6 = scalar_lea.sflag [#allocation3], %s201_s23 }
  0x45   : > { %v501_v17 = vld.sshfl [vmem:[#allocation1 + $0x10] sm:$0xff pattern:$0x73625140]  ;;  %v499_v18 = vld.sshfl [vmem:[#allocation1 + $0x8] sm:$0xff pattern:$0x73625140] }
  0x46   : > { %507 = vrot.lane.b32.xlu0 %v501_v17, %s1266_s7  ;;  %v497_v19 = vld.sshfl [vmem:[#allocation1] sm:$0xff pattern:$0x73625140] }
  0x47   : > { %503 = vrot.lane.b32.xlu1 %v497_v19, %s1266_s7  ;;  %570 = vst [vmem:[#allocation1] ss:$4 sm:$0xff] %v568_v16  ;;  %v1077_v16 = vld [vmem:[%s1509_s1 + $0x10] sm:$0xf] }
  0x4c   : > { %505 = vrot.lane.b32.xlu2 %v499_v18, %s1266_s7  ;;  %s1197_s7 = sshra.s32 %s954_s5, 4  ;;  %s1198_s7 = int_to_ptr.hbm [resolvable:$true] %s1197_s7 }
  0x4d   : > { %p1204_p1 = scmp.lt.s32.totalorder %s1198_s7, %s1511_s3 }
  0x4e   : > { %v573_v21 = vld.sshfl [vmem:[#allocation1 + $0x8] sm:$0xff pattern:$0x73625140]  ;;  %v571_v22 = vld.sshfl [vmem:[#allocation1] sm:$0xff pattern:$0x73625140] }
  0x4f   : > { %579 = vrot.lane.b32.xlu1 %v573_v21, %s1267_s8  ;;  %577 = vrot.lane.b32.xlu0 %v571_v22, %s1267_s8  ;;  %v575_v23 = vld.sshfl [vmem:[#allocation1 + $0x10] sm:$0xff pattern:$0x73625140] }
  0x50   : > { %644 = vst [vmem:[#allocation1] ss:$4 sm:$0xff] %v642_v20 }
  0x57   : > { %581 = vrot.lane.b32.xlu1 %v575_v23, %s1267_s8  ;;  %v649_v25 = vld.sshfl [vmem:[#allocation1 + $0x10] sm:$0xff pattern:$0x73625140]  ;;  %v647_v26 = vld.sshfl [vmem:[#allocation1 + $0x8] sm:$0xff pattern:$0x73625140] }
  0x58   : > { %653 = vrot.lane.b32.xlu0 %v647_v26, %s1268_s9  ;;  %v645_v27 = vld.sshfl [vmem:[#allocation1] sm:$0xff pattern:$0x73625140]  ;;  %s1199_s8 = scalar_lea.hbm %s1198_s7, 24 }
  0x59   : > { %651 = vrot.lane.b32.xlu2 %v645_v27, %s1268_s9  ;;  %718 = vst [vmem:[#allocation1] ss:$4 sm:$0xff] %v716_v24  ;;  %p1200_p12 = scmp.ne.s32.totalorder %s1198_s7, %s1199_s8 }
  0x5b   : > { %p1201_p13 = pnand %p1200_p12, %p1332_p4 }
  0x5d   : > { %p1202_p0 = pneg %p1201_p13 }
  0x60   : > { %v719_v29 = vld.sshfl [vmem:[#allocation1] sm:$0xff pattern:$0x73625140]  ;;  %v723_v30 = vld.sshfl [vmem:[#allocation1 + $0x10] sm:$0xff pattern:$0x73625140] }
  0x61   : > { %729 = vrot.lane.b32.xlu1 %v723_v30, %s1269_s10  ;;  %v721_v31 = vld.sshfl [vmem:[#allocation1 + $0x8] sm:$0xff pattern:$0x73625140]  ;;  %655 = vrot.lane.b32.xlu2 %v649_v25, %s1268_s9 }
  0x62   : > { %727 = vrot.lane.b32.xlu0 %v721_v31, %s1269_s10  ;;  %792 = vst [vmem:[#allocation1] ss:$4 sm:$0xff] %v790_v28 }
  0x69   : > { %v797_v32 = vld.sshfl [vmem:[#allocation1 + $0x10] sm:$0xff pattern:$0x73625140]  ;;  %v793_v33 = vld.sshfl [vmem:[#allocation1] sm:$0xff pattern:$0x73625140]  ;;  %725 = vrot.lane.b32.xlu2 %v719_v29, %s1269_s10 }
  0x6a   : > { %803 = vrot.lane.b32.xlu0 %v797_v32, %s1270_s11  ;;  %799 = vrot.lane.b32.xlu1 %v793_v33, %s1270_s11  ;;  %v795_v34 = vld.sshfl [vmem:[#allocation1 + $0x8] sm:$0xff pattern:$0x73625140] }
  0x71   : > { %801 = vrot.lane.b32.xlu2 %v795_v34, %s1270_s11  ;;  %v1085_v34 = vld [vmem:[%s1509_s1 + $0x18] sm:$0xf]  ;;  %s1203_s11 = scalar_lea.hbm %s1511_s3, 48 }
  0x72   : > { %p1205_p2 = scmp.lt.s32.totalorder %s1203_s11, %s1199_s8 }
  0x74   : > { %p1206_p3 = por %p1205_p2, %p1204_p1 }
  0x76   : > { %p1207_p5 = pnand %p1206_p3, %p1202_p0 }
  0x8e   : > { %v358_v37 = vpop.permute.xlu2 %357 }
  0x94   : > { %v235_v38 = vpop.permute.xlu0 %234  ;;  %v233_v39 = vpop.permute.xlu1 %232 }
  0x95   : > { %v238_v40 = vsel %vm236_vm2, %v233_v39, %v235_v38  ;;  %v251_v41 = vsel %vm243_vm0, %v235_v38, 0 }
  0x96   : > { %v248_v43 = vsel %vm243_vm0, %v238_v40, 0  ;;  %286 = vmatpush.bf16.msra.mxu2 %v251_v41  ;;  %v360_v45 = vpop.permute.xlu2 %359 }
  0x97   : > { %273 = vmatpush.bf16.msra.mxu1 %v248_v43  ;;  %v363_v46 = vsel %vm361_vm3, %v358_v37, %v360_v45  ;;  %v374_v53 = vsel %vm243_vm0, %v360_v45, 0  ;;  %v862_v45 = vld [vmem:[%s1510_s2] sm:$0xff] }
  0x98   : > { %v371_v47 = vsel %vm243_vm0, %v363_v46, 0  ;;  %v1271_v46 = vmov 0  }
  0x99   : > { %1065 = vmatmul.msk.bf16.vlgmr.msra.gmra.mxu2 %vm239_vm1, %v1062_v44  ;;  %396 = vmatpush.bf16.msrb.mxu3 %v371_v47  ;;  %v1089_v47 = vld [vmem:[%s1509_s1 + $0x1c] sm:$0xf] }
  0x9a   : > { %1064 = vmatmul.msk.bf16.vlgmr.msra.gmra.mxu1 %vm239_vm1, %v1062_v44  ;;  %1170 = vset.pattern.permute.xlu0 %v1271_v46 }
  0x9b   : > { %338 = vmatpush.bf16.msrb.mxu1 %v303_v42  ;;  %865 = vperm.xlu0 %1170, %v862_v45  }
  0x9c   : > { %v231_v49 = vpop.permute.xlu0 %230  ;;  %1071 = vmatmul.msk.bf16.vlgmr.msrb.gmra.mxu3 %vm239_vm1, %v1069_v48 }
  0x9d   : > { %v237_v50 = vsel %vm236_vm2, %v231_v49, %v233_v39 }
  0x9e   : > { %v245_v52 = vsel %vm243_vm0, %v237_v50, 0  ;;  %v430_v57 = vpop.permute.xlu2 %429 }
  0x9f   : > { %260 = vmatpush.bf16.msra.mxu0 %v245_v52 }
  0xa2   : > { %1063 = vmatmul.msk.bf16.vlgmr.msra.gmra.mxu0 %vm239_vm1, %v1062_v44 }
  0xa3   : > { %325 = vmatpush.bf16.msrb.mxu0 %v301_v51 }
  0xa6   : > { %v356_v54 = vpop.permute.xlu1 %355  ;;  %v506_v2 = vpop.permute.xlu2 %505 }
  0xa7   : > { %409 = vmatpush.bf16.msra.mxu0 %v374_v53  ;;  %v362_v55 = vsel %vm361_vm3, %v356_v54, %v358_v37 }
  0xa8   : > { %v368_v56 = vsel %vm243_vm0, %v362_v55, 0 }
  0xa9   : > { %383 = vmatpush.bf16.msrb.mxu2 %v368_v56 }
  0xaa   : > { %1068 = vmatmul.msk.bf16.vlgmr.msrb.gmra.mxu1 %vm239_vm1, %v218_v36 }
  0xac   : > { %1070 = vmatmul.msk.bf16.vlgmr.msrb.gmra.mxu2 %vm239_vm1, %v1069_v48 }
  0xaf   : > { %v434_v58 = vpop.permute.xlu1 %433 }
  0xb0   : > { %v448_v59 = vsel %vm243_vm0, %v434_v58, 0  ;;  %v432_v60 = vpop.permute.xlu0 %431 }
  0xb1   : > { %v437_v61 = vsel %vm435_vm4, %v432_v60, %v434_v58  ;;  %v436_v62 = vsel %vm435_vm4, %v430_v57, %v432_v60  ;;  %483 = vmatpush.bf16.msra.mxu3 %v448_v59 }
  0xb2   : > { %1067 = vmatmul.msk.bf16.vlgmr.msrb.gmra.mxu0 %vm239_vm1, %v218_v36  ;;  %v445_v63 = vsel %vm243_vm0, %v437_v61, 0  ;;  %v442_v0 = vsel %vm243_vm0, %v436_v62, 0  ;;  %v314_v49 = vpop.f32.mrf.mxu3 }
  0xb3   : > { %457 = vmatpush.bf16.msra.mxu1 %v442_v0  ;;  %470 = vmatpush.bf16.msra.mxu2 %v445_v63  ;;  %v652_v10 = vpop.permute.xlu2 %651 }
  0xb4   : > { %1076 = vmatmul.msk.bf16.vlgmr.msra.gmra.mxu3 %vm239_vm1, %v1073_v1 }
  0xb8   : > { %v508_v3 = vpop.permute.xlu0 %507 }
  0xb9   : > { %v522_v4 = vsel %vm243_vm0, %v508_v3, 0  ;;  %v504_v5 = vpop.permute.xlu1 %503  ;;  %v511_v6 = vsel %vm509_vm5, %v506_v2, %v508_v3 }
  0xba   : > { %1074 = vmatmul.msk.bf16.vlgmr.msra.gmra.mxu1 %vm239_vm1, %v1073_v1  ;;  %v510_v7 = vsel %vm509_vm5, %v504_v5, %v506_v2  ;;  %v519_v8 = vsel %vm243_vm0, %v511_v6, 0  ;;  %557 = vmatpush.bf16.msrb.mxu2 %v522_v4  ;;  %v316_v50 = vpop.f32.mrf.mxu3 }
  0xbb   : > { %v516_v9 = vsel %vm243_vm0, %v510_v7, 0  ;;  %544 = vmatpush.bf16.msrb.mxu1 %v519_v8  ;;  %v656_v17 = vpop.permute.xlu2 %655 }
  0xbc   : > { %1075 = vmatmul.msk.bf16.vlgmr.msra.gmra.mxu2 %vm239_vm1, %v1073_v1  ;;  %531 = vmatpush.bf16.msrb.mxu0 %v516_v9  ;;  %v670_v27 = vsel %vm243_vm0, %v656_v17, 0 }
  0xc1   : > { %v580_v11 = vpop.permute.xlu1 %579  ;;  %v578_v12 = vpop.permute.xlu0 %577 }
  0xc2   : > { %1072 = vmatmul.msk.bf16.vlgmr.msra.gmra.mxu0 %vm239_vm1, %v1069_v48  ;;  %v584_v13 = vsel %vm583_vm6, %v578_v12, %v580_v11  ;;  %v1093_v48 = vld [vmem:[%s1509_s1 + $0x20] sm:$0xf] }
  0xc3   : > { %v590_v14 = vsel %vm243_vm0, %v584_v13, 0  ;;  %v726_v28 = vpop.permute.xlu2 %725 }
  0xc4   : > { %605 = vmatpush.bf16.msrb.mxu3 %v590_v14 }
  0xc7   : > { %1082 = vmatmul.msk.bf16.vlgmr.msrb.gmra.mxu3 %vm239_vm1, %v1081_v15 }
  0xc9   : > { %v582_v18 = vpop.permute.xlu1 %581 }
  0xca   : > { %1079 = vmatmul.msk.bf16.vlgmr.msrb.gmra.mxu1 %vm239_vm1, %v1077_v16  ;;  %v585_v19 = vsel %vm583_vm6, %v580_v11, %v582_v18  ;;  %v596_v20 = vsel %vm243_vm0, %v582_v18, 0  ;;  %v654_v21 = vpop.permute.xlu0 %653  ;;  %vm933_vm6 = vcmask 261120  }
  0xcb   : > { %v593_v22 = vsel %vm243_vm0, %v585_v19, 0  ;;  %v658_v23 = vsel %vm657_vm7, %v652_v10, %v654_v21  ;;  %v659_v24 = vsel %vm657_vm7, %v654_v21, %v656_v17  ;;  %631 = vmatpush.bf16.msra.mxu1 %v596_v20  ;;  %v802_v37 = vpop.permute.xlu2 %801 }
  0xcc   : > { %1080 = vmatmul.msk.bf16.vlgmr.msrb.gmra.mxu2 %vm239_vm1, %v1077_v16  ;;  %v664_v25 = vsel %vm243_vm0, %v658_v23, 0  ;;  %v667_v26 = vsel %vm243_vm0, %v659_v24, 0  ;;  %618 = vmatpush.bf16.msra.mxu0 %v593_v22 }
  0xcd   : > { %679 = vmatpush.bf16.msra.mxu2 %v664_v25  ;;  %692 = vmatpush.bf16.msra.mxu3 %v667_v26 }
  0xd2   : > { %1078 = vmatmul.msk.bf16.vlgmr.msrb.gmra.mxu0 %vm239_vm1, %v1077_v16 }
  0xd3   : > { %705 = vmatpush.bf16.msrb.mxu0 %v670_v27  ;;  %v730_v29 = vpop.permute.xlu1 %729 }
  0xd4   : > { %v744_v30 = vsel %vm243_vm0, %v730_v29, 0  ;;  %v728_v31 = vpop.permute.xlu0 %727 }
  0xd5   : > { %v733_v32 = vsel %vm731_vm8, %v728_v31, %v730_v29  ;;  %v732_v33 = vsel %vm731_vm8, %v726_v28, %v728_v31  ;;  %779 = vmatpush.bf16.msrb.mxu3 %v744_v30 }
  0xd6   : > { %v741_v35 = vsel %vm243_vm0, %v733_v32, 0  ;;  %v738_v36 = vsel %vm243_vm0, %v732_v33, 0 }
  0xd7   : > { %1087 = vmatmul.msk.bf16.vlgmr.msra.gmra.mxu3 %vm239_vm1, %v1085_v34  ;;  %753 = vmatpush.bf16.msrb.mxu1 %v738_v36 }
  0xd8   : > { %766 = vmatpush.bf16.msrb.mxu2 %v741_v35 }
  0xda   : > { %1084 = vmatmul.msk.bf16.vlgmr.msra.gmra.mxu1 %vm239_vm1, %v1081_v15 }
  0xdc   : > { %1086 = vmatmul.msk.bf16.vlgmr.msra.gmra.mxu2 %vm239_vm1, %v1085_v34  ;;  %v804_v38 = vpop.permute.xlu0 %803  ;;  %v800_v39 = vpop.permute.xlu1 %799 }
  0xdd   : > { %v818_v40 = vsel %vm243_vm0, %v804_v38, 0  ;;  %v807_v41 = vsel %vm805_vm9, %v802_v37, %v804_v38  ;;  %v806_v42 = vsel %vm805_vm9, %v800_v39, %v802_v37 }
  0xde   : > { %v815_v43 = vsel %vm243_vm0, %v807_v41, 0  ;;  %853 = vmatpush.bf16.msra.mxu2 %v818_v40  ;;  %v812_v44 = vsel %vm243_vm0, %v806_v42, 0 }
  0xdf   : > { %840 = vmatpush.bf16.msra.mxu1 %v815_v43 }
  0xe2   : > { %1083 = vmatmul.msk.bf16.vlgmr.msra.gmra.mxu0 %vm239_vm1, %v1081_v15 }
  0xe3   : > { %827 = vmatpush.bf16.msra.mxu0 %v812_v44 }
  0xe7   : > { %1092 = vmatmul.msk.bf16.vlgmr.msrb.gmra.mxu3 %vm239_vm1, %v1089_v47 }
  0xea   : > { %1090 = vmatmul.msk.bf16.vlgmr.msrb.gmra.mxu1 %vm239_vm1, %v1089_v47 }
  0xec   : > { %1091 = vmatmul.msk.bf16.vlgmr.msrb.gmra.mxu2 %vm239_vm1, %v1089_v47 }
  0xf2   : > { %1088 = vmatmul.msk.bf16.vlgmr.msrb.gmra.mxu0 %vm239_vm1, %v1085_v34 }
  0xfa   : > { %1095 = vmatmul.msk.bf16.vlgmr.msra.gmra.mxu1 %vm239_vm1, %v1093_v48 }
  0xfc   : > { %1096 = vmatmul.msk.bf16.vlgmr.msra.gmra.mxu2 %vm239_vm1, %v1093_v48 }
 0x102   : > { %1094 = vmatmul.msk.bf16.vlgmr.msra.gmra.mxu0 %vm239_vm1, %v1093_v48 }
 0x10d   : > { %v866_v50 = vpop.permute.xlu0 %865 }
 0x117   : > { %v275_v51 = vpop.f32.mrf.mxu1 }
 0x11c   : > { %v288_v52 = vpop.f32.mrf.mxu2 }
 0x11f   : > { %v262_v53 = vpop.f32.mrf.mxu0  ;;  %v277_v54 = vpop.f32.mrf.mxu1 }
 0x120   : > { %v315_v55 = vadd.f32 %v314_v49, %v262_v53  ;;  %v398_v56 = vpop.f32.mrf.mxu3 }
 0x124   : > { %v290_v57 = vpop.f32.mrf.mxu2 }
 0x127   : > { %v264_v58 = vpop.f32.mrf.mxu0  ;;  %v340_v59 = vpop.f32.mrf.mxu1 }
 0x128   : > { %v341_v60 = vadd.f32 %v340_v59, %v288_v52  ;;  %v400_v61 = vpop.f32.mrf.mxu3 }
 0x12f   : > { %v385_v62 = vpop.f32.mrf.mxu2  ;;  %v327_v63 = vpop.f32.mrf.mxu0 }
 0x130   : > { %v415_v0 = vadd.f32 %v385_v62, %v315_v55  ;;  %v328_v1 = vadd.f32 %v327_v63, %v275_v51  ;;  %v342_v2 = vpop.f32.mrf.mxu1 }
 0x132   : > { %v416_v3 = vadd.f32 %v398_v56, %v328_v1 }
 0x137   : > { %v387_v4 = vpop.f32.mrf.mxu2  ;;  %v329_v5 = vpop.f32.mrf.mxu0 }
 0x138   : > { %v459_v6 = vpop.f32.mrf.mxu1  ;;  %v485_v7 = vpop.f32.mrf.mxu3 }
 0x139   : > { %v489_v40 = vadd.f32 %v459_v6, %v415_v0 }
 0x13f   : > { %v472_v8 = vpop.f32.mrf.mxu2  ;;  %v411_v9 = vpop.f32.mrf.mxu0 }
 0x140   : > { %v461_v10 = vpop.f32.mrf.mxu1  ;;  %v487_v11 = vpop.f32.mrf.mxu3  ;;  %v490_v32 = vadd.f32 %v472_v8, %v416_v3  ;;  %v417_v36 = vadd.f32 %v411_v9, %v341_v60 }
 0x142   : > { %v491_v41 = vadd.f32 %v485_v7, %v417_v36 }
 0x147   : > { %v474_v12 = vpop.f32.mrf.mxu2  ;;  %v413_v13 = vpop.f32.mrf.mxu0 }
 0x148   : > { %v546_v14 = vpop.f32.mrf.mxu1 }
 0x149   : > { %v564_v33 = vadd.f32 %v546_v14, %v490_v32 }
 0x14a   : > { %v607_v15 = vpop.f32.mrf.mxu3 }
 0x14f   : > { %v559_v16 = vpop.f32.mrf.mxu2  ;;  %v533_v17 = vpop.f32.mrf.mxu0 }
 0x150   : > { %v548_v18 = vpop.f32.mrf.mxu1  ;;  %v565_v43 = vadd.f32 %v559_v16, %v491_v41  ;;  %v563_v44 = vadd.f32 %v533_v17, %v489_v40 }
 0x152   : > { %v609_v19 = vpop.f32.mrf.mxu3  ;;  %v637_v52 = vadd.f32 %v607_v15, %v563_v44 }
 0x157   : > { %v561_v20 = vpop.f32.mrf.mxu2  ;;  %v535_v21 = vpop.f32.mrf.mxu0 }
 0x158   : > { %v633_v22 = vpop.f32.mrf.mxu1 }
 0x159   : > { %v639_v48 = vadd.f32 %v633_v22, %v565_v43 }
 0x15a   : > { %v694_v23 = vpop.f32.mrf.mxu3 }
 0x15f   : > { %v681_v24 = vpop.f32.mrf.mxu2  ;;  %v620_v25 = vpop.f32.mrf.mxu0 }
 0x160   : > { %v635_v26 = vpop.f32.mrf.mxu1  ;;  %v638_v38 = vadd.f32 %v620_v25, %v564_v33  ;;  %v711_v55 = vadd.f32 %v681_v24, %v637_v52 }
 0x162   : > { %v696_v27 = vpop.f32.mrf.mxu3  ;;  %v712_v42 = vadd.f32 %v694_v23, %v638_v38 }
 0x167   : > { %v683_v28 = vpop.f32.mrf.mxu2  ;;  %v622_v29 = vpop.f32.mrf.mxu0 }
 0x168   : > { %v755_v30 = vpop.f32.mrf.mxu1 }
 0x169   : > { %v785_v57 = vadd.f32 %v755_v30, %v711_v55 }
 0x16a   : > { %v781_v31 = vpop.f32.mrf.mxu3 }
 0x16f   : > { %v768_v34 = vpop.f32.mrf.mxu2  ;;  %v707_v35 = vpop.f32.mrf.mxu0 }
 0x170   : > { %v757_v37 = vpop.f32.mrf.mxu1  ;;  %v786_v45 = vadd.f32 %v768_v34, %v712_v42  ;;  %v713_v53 = vadd.f32 %v707_v35, %v639_v48 }
 0x172   : > { %v783_v39 = vpop.f32.mrf.mxu3  ;;  %v787_v58 = vadd.f32 %v781_v31, %v713_v53 }
 0x177   : > { %v770_v46 = vpop.f32.mrf.mxu2  ;;  %v709_v47 = vpop.f32.mrf.mxu0 }
 0x178   : > { %v842_v49 = vpop.f32.mrf.mxu1 }
 0x179   : > { %v860_v51 = vadd.f32 %v842_v49, %v786_v45 }
 0x17b   : > { %v869_v54 = vadd.f32 %v866_v50, %v860_v51 }
 0x17d   : > { %v1098_v56 = vmul.f32 -1.442695, %v869_v54 }
 0x17f   : > { %1171 = vpow2.f32 %v1098_v56  ;;  %v855_v59 = vpop.f32.mrf.mxu2  ;;  %v829_v60 = vpop.f32.mrf.mxu0 }
 0x180   : > { %v861_v61 = vadd.f32 %v855_v59, %v787_v58  ;;  %v859_v62 = vadd.f32 %v829_v60, %v785_v57  ;;  %v844_v63 = vpop.f32.mrf.mxu1 }
 0x182   : > { %v1459_v0 = vadd.f32 %v866_v50, %v861_v61  ;;  %v1461_v1 = vadd.f32 %v866_v50, %v859_v62 }
 0x184   : > { %v1099_v2 = vmul.f32 -1.442695, %v1459_v0  ;;  %v1097_v3 = vmul.f32 -1.442695, %v1461_v1 }
 0x185   : > { %v1172_v4 = vpop.eup %1171 }
 0x186   : > { %v881_v5 = vadd.f32 1.0, %v1172_v4  ;;  %1173 = vpow2.f32 %v1099_v2 }
 0x187   : > { %1175 = vpow2.f32 %v1097_v3  ;;  %v831_v6 = vpop.f32.mrf.mxu0  ;;  %v857_v7 = vpop.f32.mrf.mxu2 }
 0x188   : > { %1177 = vrcp.f32 %v881_v5  ;;  %v909_v15 = vand.u32 2147483648, %v881_v5  ;;  %v907_v17 = vand.u32 2147483647, %v881_v5  ;;  %vm903_vm11 = vweird.f32 %v881_v5 }
 0x18a   : > { %v910_v21 = vor.u32 1.1754944e-38, %v909_v15  ;;  %vm908_vm13 = vcmp.eq.f32.partialorder %v907_v17, 8.507059e+37 }
 0x18c   : > { %v1174_v8 = vpop.eup %1173 }
 0x18d   : > { %v1176_v9 = vpop.eup %1175  ;;  %v882_v10 = vadd.f32 1.0, %v1174_v8 }
 0x18e   : > { %v1178_v11 = vpop.eup %1177  ;;  %v880_v12 = vadd.f32 1.0, %v1176_v9 }
 0x18f   : > { %v899_v13 = vmul.f32 %v1178_v11, %v881_v5  ;;  %1179 = vrcp.f32 %v882_v10  ;;  %vm904_vm10 = vweird.f32 %v1178_v11  ;;  %v924_v28 = vand.u32 2147483648, %v882_v10 }
 0x190   : > { %1181 = vrcp.f32 %v880_v12  ;;  %vm905_vm12 = vmor %vm903_vm11, %vm904_vm10  ;;  %v922_v31 = vand.u32 2147483647, %v882_v10  ;;  %v894_v32 = vand.u32 2147483648, %v880_v12  ;;  %v892_v34 = vand.u32 2147483647, %v880_v12 }
 0x191   : > { %v900_v14 = vsub.f32 1.0, %v899_v13  ;;  %vm918_vm0 = vweird.f32 %v882_v10  ;;  %v925_v36 = vor.u32 1.1754944e-38, %v924_v28  ;;  %vm888_vm2 = vweird.f32 %v880_v12 }
 0x192   : > { %vm923_vm3 = vcmp.eq.f32.partialorder %v922_v31, 8.507059e+37  ;;  %v895_v39 = vor.u32 1.1754944e-38, %v894_v32  ;;  %vm893_vm5 = vcmp.eq.f32.partialorder %v892_v34, 8.507059e+37 }
 0x193   : > { %v901_v16 = vmul.f32 %v1178_v11, %v900_v14 }
 0x195   : > { %v1180_v18 = vpop.eup %1179  ;;  %v902_v19 = vadd.f32 %v1178_v11, %v901_v16 }
 0x196   : > { %v1182_v20 = vpop.eup %1181  ;;  %v914_v22 = vmul.f32 %v1180_v18, %v882_v10  ;;  %vm919_vm14 = vweird.f32 %v1180_v18 }
 0x197   : > { %v906_v23 = vsel %vm905_vm12, %v1178_v11, %v902_v19  ;;  %v884_v24 = vmul.f32 %v1182_v20, %v880_v12  ;;  %vm889_vm15 = vweird.f32 %v1182_v20  ;;  %vm920_vm1 = vmor %vm918_vm0, %vm919_vm14 }
 0x198   : > { %v911_v25 = vsel %vm908_vm13, %v910_v21, %v906_v23  ;;  %v915_v26 = vsub.f32 1.0, %v914_v22  ;;  %vm890_vm4 = vmor %vm888_vm2, %vm889_vm15 }
 0x199   : > { %v929_v27 = vmul.f32 %v911_v25, %v869_v54  ;;  %v885_v29 = vsub.f32 1.0, %v884_v24 }
 0x19a   : > { %v916_v30 = vmul.f32 %v1180_v18, %v915_v26 }
 0x19b   : > { %932 = vst [vmem:[%s203_s28 + $0x8] sm:$0xff] %v929_v27  ;;  %v886_v33 = vmul.f32 %v1182_v20, %v885_v29 }
 0x19c   : > { %v917_v35 = vadd.f32 %v1180_v18, %v916_v30 }
 0x19d   : > { %v887_v37 = vadd.f32 %v1182_v20, %v886_v33 }
 0x19e   : > { %v921_v38 = vsel %vm920_vm1, %v1180_v18, %v917_v35 }
 0x19f   : > { %v926_v40 = vsel %vm923_vm3, %v925_v36, %v921_v38  ;;  %v891_v41 = vsel %vm890_vm4, %v1182_v20, %v887_v37 }
 0x1a0   : > { %v930_v42 = vmul.f32 %v926_v40, %v1459_v0  ;;  %v896_v43 = vsel %vm893_vm5, %v895_v39, %v891_v41 }
 0x1a1   : > { %v928_v44 = vmul.f32 %v896_v43, %v1461_v1 }
 0x1a2   : > { %934 = vst.msk [vmem:[%s203_s28 + $0x10] sm:$0xff] %vm933_vm6, %v930_v42 }
 0x1a3   : > { %931 = vst [vmem:[%s203_s28] sm:$0xff] %v928_v44 }
 0x1a4   : > { %1210 = shalt.err (!%p1207_p5)
}
 0x1a5   : > { %1106 = dma.vmem_to_hbm [thread:$0]  (%p1332_p4), %s952_s15, 384, %s954_s5, %s936_s6  }
 0x1a6 PF: > { %p1112_p6 = scmp.ge.s32.totalorder %s1261_s17, 2  ;;  %s965_s21 = sand.u32 1, %s1241_s12  }
 0x1a7   : > { %s966_s23 = scalar_lea.sflag [#allocation3], %s965_s21 }
 0x1a8   : > { %p1109_p7 = pnand %p1112_p6, %p1339_p8 }
 0x1aa   : > { %p1110_p9 = pneg %p1109_p7 }
 0x1ac   : > { %1236 = dma.done.wait (%p1110_p9), %s966_s23, 384  }
 0x1ad   : > { %1238 = vsyncadd (%p1110_p9), %s966_s23, 4294966912  ;;  %s16_s17 = sadd.s32 1, %s1261_s17   ;;  %s1514_s12 = smov %s1245_s13 }
 0x1ae   : > { %p13_p10 = scmp.ge.s32.totalorder %s16_s17, 4   ;;  %s1515_s13 = smov %s1249_s14 }
 0x1af   : > { %s1516_s14 = smov %s1345_s25  ;;  %s1517_s15 = smov %s1257_s16 }
 0x1b0   : > { %s1518_s16 = smov %s1520_s20  ;;  %15 = sbr.rel (!%p13_p10) target bundleno = 4 (0x4), region = 81 }
 0x1b5   :  { %972 = vsyncpa [#allocation3], 1 }
 0x1b6   :  { %974 = vsyncpa [#allocation3 + $0x1], 1 }

</bundles_post_ra>
